<compile_context>
chip_gen: v7x
topology: tpu7x:2x2x1
jax: 0.10.0
libtpu: 0.0.40
codegen_flags: <defaults>
</compile_context>

<pallas_src>
import math
import functools

import jax
import jax.numpy as jnp
from jax import lax
from jax.experimental import pallas as pl
from jax.experimental.pallas import tpu as pltpu


def _self_attn_kernel(x_tile_ref, x_full_ref, wq_ref, wkv_ref, pebd_ref, wp_ref,
                      o_ref, k_sc, v_sc, y_sc, *, n_head, T, D, R, tq):
    """Grid point = (batch element, query tile).

    x_tile_ref : (1, tq, E) f32   query-tile rows of x
    x_full_ref : (1, T, E)  f32   whole sequence (for K/V projection, used at qi==0)
    wq_ref     : (E, E)     bf16  wq.T * 1/sqrt(D)
    wkv_ref    : (E, 2E)    bf16  [wk.T | wv.T]
    pebd_ref   : (E, H*2R)  bf16  block-diagonal relative position embeddings
    wp_ref     : (E, E)     bf16  wp.T
    o_ref      : (1, tq, E)       output tile
    k_sc/v_sc  : (T, E)     bf16  whole-sequence K / V (persist across query tiles)
    y_sc       : (tq, E)    bf16  per-tile multi-head output slab
    """
    E = n_head * D
    two_r = 2 * R
    qi = pl.program_id(1)
    # a @ b.T contraction (rhs consumed transposed by the MXU).
    cdims = (((1,), (1,)), ((), ()))

    # ---- K/V projection for the WHOLE sequence, once per batch element ----------
    @pl.when(qi == 0)
    def _():
        xf = x_full_ref[0].astype(jnp.bfloat16)                                # (T, E)
        kv = jnp.dot(xf, wkv_ref[...], preferred_element_type=jnp.float32)     # (T, 2E)
        k_sc[...] = kv[:, :E].astype(jnp.bfloat16)
        v_sc[...] = kv[:, E:].astype(jnp.bfloat16)

    # ---- per-tile Q projection (1/sqrt(D) already folded into wq) ---------------
    xt = x_tile_ref[0].astype(jnp.bfloat16)                                    # (tq, E)
    q = jnp.dot(xt, wq_ref[...],
                preferred_element_type=jnp.float32).astype(jnp.bfloat16)       # (tq, E)

    # All heads' relative-position logits in ONE MXU call: (tq, E) @ (E, H*2R).
    b_rel_all = jnp.dot(q, pebd_ref[...], preferred_element_type=jnp.float32)

    # ---- shared relative-position machinery (hoisted out of the head loop) ------
    row0 = qi * tq
    gi = row0 + lax.broadcasted_iota(jnp.int32, (tq, 1), 0)      # global row index
    j_idx = lax.broadcasted_iota(jnp.int32, (tq, T), 1)
    d2 = j_idx - gi                                              # j - i
    hi_mask = d2 >= (R - 1)   # clamp(j-i) ==  R-1  -> rel column R-1
    lo_mask = d2 <= -R        # clamp(j-i) == -R    -> rel column R
    n_rep = pl.cdiv(T, two_r)

    # Doubling shear: row i of the (tq, 2R) band must be rotated right by
    # (global_i mod 2R).  Rolls compose additively mod 2R, so we apply a few
    # conditional static rolls (one per set bit) instead of the old 2R-pass
    # compare/select loop that saturated the VALU slot.
    shear_bits = []
    for kbit in range((T - 1).bit_length()):
        amt = (1 << kbit) % two_r
        if amt:
            shear_bits.append((amt, (gi & (1 << kbit)) != 0))

    # ---- heads: write each head's (tq, D) result into the y scratch slab --------
    for h in range(n_head):
        qh = q[:, h * D:(h + 1) * D]                             # (tq, D) bf16
        kh = k_sc[:, h * D:(h + 1) * D]                          # (T, D)  bf16
        vh = v_sc[:, h * D:(h + 1) * D]                          # (T, D)  bf16

        # Content logits (tq, T): q_h @ k_h.T.
        attn_val = lax.dot_general(qh, kh, cdims,
                                   preferred_element_type=jnp.float32)

        # Relative-position logits for this head, (tq, 2R).
        b_rel = b_rel_all[:, h * two_r:(h + 1) * two_r]

        # Banded shear: cur[i, c] = b_rel[i, (c - global_i) mod 2R].
        cur = b_rel
        for amt, bmask in shear_bits:
            cur = jnp.where(bmask, jnp.roll(cur, amt, axis=1), cur)

        # Tile along columns so w_band[i, j] = b_rel[i, (j - global_i) mod 2R].
        if n_rep > 1:
            w_band = jnp.concatenate([cur] * n_rep, axis=1)[:, :T]
        else:
            w_band = cur[:, :T]

        # Clamped regions: far future -> column R-1, far past -> column R.
        att_pos = jnp.where(hi_mask, b_rel[:, R - 1:R],
                            jnp.where(lo_mask, b_rel[:, R:R + 1], w_band))

        logits = attn_val + att_pos            # 1/sqrt(D) already folded into q
        m = jnp.max(logits, axis=-1, keepdims=True)
        e = jnp.exp(logits - m)                # f32 softmax math (v5e-safe)
        denom = jnp.sum(e, axis=-1, keepdims=True)
        att = (e * pl.reciprocal(denom, approx=True)).astype(jnp.bfloat16)

        yh = jnp.dot(att, vh, preferred_element_type=jnp.float32)   # (tq, D)
        y_sc[:, h * D:(h + 1) * D] = yh.astype(jnp.bfloat16)

    # ---- one full-width output projection for all heads -------------------------
    out = jnp.dot(y_sc[...], wp_ref[...], preferred_element_type=jnp.float32)
    o_ref[0] = out.astype(o_ref.dtype)


@functools.partial(jax.jit,
                   static_argnames=("n_head", "tq", "out_dtype", "vmem_limit_bytes"))
def self_attention_pallas(x, wq, wk, wv, wp, pos_emb_k, *, n_head, tq=None,
                          out_dtype=jnp.float32, vmem_limit_bytes=None):
    """x: (B, T, E) f32. wq/wk/wv/wp: (E, E) torch Linear weights. pos_emb_k: (2R, D)."""
    B, T, E = x.shape
    assert E % n_head == 0
    D = E // n_head
    two_r, pd = pos_emb_k.shape
    assert pd == D
    R = two_r // 2

    if tq is None:
        tq = 256 if T % 256 == 0 else T
    assert T % tq == 0, "query tile size must divide the sequence length"
    n_qt = T // tq

    scale = 1.0 / math.sqrt(D)
    f = jnp.float32
    # Pre-transposed / fused weights, cast to bf16 once (amortized over B):
    wq_t = (wq.astype(f) * scale).T.astype(jnp.bfloat16)                  # (E, E)
    wkv_t = jnp.concatenate([wk.T, wv.T], axis=1).astype(jnp.bfloat16)    # (E, 2E)
    wp_t = wp.T.astype(jnp.bfloat16)                                      # (E, E)
    # Block-diagonal pos-emb: q(tq,E) @ pe_bd -> per-head (tq, 2R) relative logits.
    pe_bd = jnp.zeros((E, n_head * two_r), f)
    for h in range(n_head):
        pe_bd = pe_bd.at[h * D:(h + 1) * D,
                         h * two_r:(h + 1) * two_r].set(pos_emb_k.T.astype(f))
    pe_bd = pe_bd.astype(jnp.bfloat16)

    kernel = functools.partial(_self_attn_kernel,
                               n_head=n_head, T=T, D=D, R=R, tq=tq)
    const = lambda b, qi: (0, 0)   # weights: constant block index -> DMA'd once

    return pl.pallas_call(
        kernel,
        out_shape=jax.ShapeDtypeStruct((B, T, E), out_dtype),
        grid_spec=pltpu.PrefetchScalarGridSpec(
            num_scalar_prefetch=0,
            grid=(B, n_qt),
            in_specs=[
                pl.BlockSpec((1, tq, E), lambda b, qi: (b, qi, 0)),  # x query tile (f32)
                pl.BlockSpec((1, T, E), lambda b, qi: (b, 0, 0)),    # x full seq (f32)
                pl.BlockSpec((E, E), const),                         # wq.T * 1/sqrt(D)
                pl.BlockSpec((E, 2 * E), const),                     # [wk.T | wv.T]
                pl.BlockSpec((E, n_head * two_r), const),            # block-diag pos emb
                pl.BlockSpec((E, E), const),                         # wp.T
            ],
            out_specs=pl.BlockSpec((1, tq, E), lambda b, qi: (b, qi, 0)),
            scratch_shapes=[
                pltpu.VMEM((T, E), jnp.bfloat16),    # K (whole sequence)
                pltpu.VMEM((T, E), jnp.bfloat16),    # V (whole sequence)
                pltpu.VMEM((tq, E), jnp.bfloat16),   # per-tile multi-head output slab
            ],
        ),
        compiler_params=pltpu.CompilerParams(
            # Batch axis parallel (megacore / v7x 2-TC sharding); query-tile axis is
            # "arbitrary" because the K/V scratch is filled at qi == 0 and reused.
            dimension_semantics=("parallel", "arbitrary"),
            vmem_limit_bytes=vmem_limit_bytes,
        ),
    )(x, x, wq_t, wkv_t, pe_bd, wp_t)


def self_attention_ref(x, wq, wk, wv, wp, pos_emb_k, n_head):
    """Pure-JAX reference mirroring the PyTorch forward exactly (f32)."""
    B, T, E = x.shape
    D = E // n_head
    two_r, _ = pos_emb_k.shape
    R = two_r // 2

    def heads(w):
        return jnp.transpose((x @ w.T).reshape(B, T, n_head, D), (0, 2, 1, 3))

    q, k, v = heads(wq), heads(wk), heads(wv)
    att_rel_pos = q @ pos_emb_k.T[None, None]                          # (B,H,T,2R)
    idx = jnp.clip(jnp.arange(T)[None, :] - jnp.arange(T)[:, None], -R, R - 1) % two_r
    att_pos = jnp.take_along_axis(
        att_rel_pos, jnp.broadcast_to(idx, (B, n_head, T, T)), axis=3)
    attn_val = q @ jnp.swapaxes(k, -2, -1)
    att = jax.nn.softmax((attn_val + att_pos) / math.sqrt(D), axis=-1)
    y = att @ v
    y = jnp.transpose(y, (0, 2, 1, 3)).reshape(B, T, E)
    return y @ wp.T


if __name__ == "__main__":
    def run_case(B, T, E, H, R, tq=None):
        D = E // H
        key = jax.random.PRNGKey(0)
        kx, kq, kk, kv, kp, kpe = jax.random.split(key, 6)
        x = jax.random.normal(kx, (B, T, E), jnp.float32)
        wq = jax.random.normal(kq, (E, E), jnp.float32) * 0.02
        wk = jax.random.normal(kk, (E, E), jnp.float32) * 0.02
        wv = jax.random.normal(kv, (E, E), jnp.float32) * 0.02
        wp = jax.random.normal(kp, (E, E), jnp.float32) * 0.02
        pos_emb_k = jax.random.normal(kpe, (2 * R, D), jnp.float32) * 0.02

        out = self_attention_pallas(x, wq, wk, wv, wp, pos_emb_k, n_head=H, tq=tq)
        out = jax.block_until_ready(out)
        ref = self_attention_ref(x, wq, wk, wv, wp, pos_emb_k, H)
        assert out.shape == (B, T, E)
        # bf16 MXU inputs + approx reciprocal => loosened (relative) tolerance.
        err = float(jnp.max(jnp.abs(out - ref)))
        ref_scale = float(jnp.max(jnp.abs(ref)))
        assert err <= 2e-2 * ref_scale + 2e-3, (
            f"case (B={B},T={T},E={E},H={H},R={R},tq={tq}): "
            f"max err {err} (ref scale {ref_scale})")

    # Small config consistent with the module (embed=32, heads=4, radius=4).
    run_case(B=2, T=8, E=32, H=4, R=4)
    # Multi-tile case: exercises the query-tile grid axis, K/V scratch reuse
    # across tiles, shear with non-zero row offsets, and band tiling (T > 2R).
    run_case(B=2, T=32, E=32, H=4, R=4, tq=8)
    print("KERNEL_OK")
</pallas_src>

<mosaic_0001>
module attributes {stable_mosaic.version = 11 : i64} {
  func.func @_self_attn_kernel(%arg0: i32, %arg1: i32, %arg2: memref<1x8x32xf32, #tpu.memory_space<vmem>>, %arg3: memref<1x8x32xf32, #tpu.memory_space<vmem>>, %arg4: memref<32x32xbf16, #tpu.memory_space<vmem>>, %arg5: memref<32x64xbf16, #tpu.memory_space<vmem>>, %arg6: memref<32x32xbf16, #tpu.memory_space<vmem>>, %arg7: memref<32x32xbf16, #tpu.memory_space<vmem>>, %arg8: memref<1x8x32xf32, #tpu.memory_space<vmem>>, %arg9: memref<8x32xbf16, #tpu.memory_space<vmem>>, %arg10: memref<8x32xbf16, #tpu.memory_space<vmem>>, %arg11: memref<8x32xbf16, #tpu.memory_space<vmem>>) attributes {dimension_semantics = [#tpu.dimension_semantics<parallel>, #tpu.dimension_semantics<arbitrary>], iteration_bounds = array<i64: 2, 1>, scalar_prefetch = 0 : i64, scratch_operands = 3 : i64, tpu.core_type = #tpu.core_type<tc>, window_params = [{transform_indices = @transform_0, window_bounds = array<i64: 1, 8, 32>}, {transform_indices = @transform_1, window_bounds = array<i64: 1, 8, 32>}, {pipeline_mode = #tpu.pipeline_mode<synchronous>, transform_indices = @transform_2, window_bounds = array<i64: 32, 32>}, {pipeline_mode = #tpu.pipeline_mode<synchronous>, transform_indices = @transform_3, window_bounds = array<i64: 32, 64>}, {pipeline_mode = #tpu.pipeline_mode<synchronous>, transform_indices = @transform_4, window_bounds = array<i64: 32, 32>}, {pipeline_mode = #tpu.pipeline_mode<synchronous>, transform_indices = @transform_5, window_bounds = array<i64: 32, 32>}, {transform_indices = @transform_6, window_bounds = array<i64: 1, 8, 32>}]} {
    %c0_i32 = arith.constant 0 : i32
    %0 = arith.cmpi eq, %arg1, %c0_i32 : i32
    %1 = arith.extui %0 : i1 to i32
    %c0_i32_0 = arith.constant 0 : i32
    %2 = arith.cmpi ne, %1, %c0_i32_0 : i32
    scf.if %2 {
      %c0_56 = arith.constant 0 : index
      %c0_57 = arith.constant 0 : index
      %c0_58 = arith.constant 0 : index
      %224 = vector.load %arg3[%c0_56, %c0_57, %c0_58] : memref<1x8x32xf32, #tpu.memory_space<vmem>>, vector<1x8x32xf32>
      %225 = vector.shape_cast %224 : vector<1x8x32xf32> to vector<8x32xf32>
      %226 = arith.truncf %225 : vector<8x32xf32> to vector<8x32xbf16>
      %c0_59 = arith.constant 0 : index
      %c0_60 = arith.constant 0 : index
      %227 = vector.load %arg5[%c0_59, %c0_60] : memref<32x64xbf16, #tpu.memory_space<vmem>>, vector<32x64xbf16>
      %cst_61 = arith.constant dense<0.000000e+00> : vector<8x64xf32>
      %228 = tpu.matmul %226, %227, %cst_61 {dimension_numbers = #tpu.dot_dimension_numbers<[1], [0], [0], [1], [0, 0, 1, 1], [], []>} : vector<8x32xbf16>, vector<32x64xbf16>, vector<8x64xf32> -> vector<8x64xf32>
      %229 = vector.extract_strided_slice %228 {offsets = [0, 0], sizes = [8, 32], strides = [1, 1]} : vector<8x64xf32> to vector<8x32xf32>
      %230 = arith.truncf %229 : vector<8x32xf32> to vector<8x32xbf16>
      %c0_62 = arith.constant 0 : index
      %c0_63 = arith.constant 0 : index
      %231 = vector.load %arg9[%c0_62, %c0_63] : memref<8x32xbf16, #tpu.memory_space<vmem>>, vector<8x32xbf16>
      tpu.vector_store %arg9[%c0_62, %c0_63], %230 {strides = array<i32>} : memref<8x32xbf16, #tpu.memory_space<vmem>>, vector<8x32xbf16>,
      %232 = vector.extract_strided_slice %228 {offsets = [0, 32], sizes = [8, 32], strides = [1, 1]} : vector<8x64xf32> to vector<8x32xf32>
      %233 = arith.truncf %232 : vector<8x32xf32> to vector<8x32xbf16>
      %c0_64 = arith.constant 0 : index
      %c0_65 = arith.constant 0 : index
      %234 = vector.load %arg10[%c0_64, %c0_65] : memref<8x32xbf16, #tpu.memory_space<vmem>>, vector<8x32xbf16>
      tpu.vector_store %arg10[%c0_64, %c0_65], %233 {strides = array<i32>} : memref<8x32xbf16, #tpu.memory_space<vmem>>, vector<8x32xbf16>,
    } else {
    }
    %c0 = arith.constant 0 : index
    %c0_1 = arith.constant 0 : index
    %c0_2 = arith.constant 0 : index
    %3 = vector.load %arg2[%c0, %c0_1, %c0_2] : memref<1x8x32xf32, #tpu.memory_space<vmem>>, vector<1x8x32xf32>
    %4 = vector.shape_cast %3 : vector<1x8x32xf32> to vector<8x32xf32>
    %5 = arith.truncf %4 : vector<8x32xf32> to vector<8x32xbf16>
    %c0_3 = arith.constant 0 : index
    %c0_4 = arith.constant 0 : index
    %6 = vector.load %arg4[%c0_3, %c0_4] : memref<32x32xbf16, #tpu.memory_space<vmem>>, vector<32x32xbf16>
    %cst = arith.constant dense<0.000000e+00> : vector<8x32xf32>
    %7 = tpu.matmul %5, %6, %cst {dimension_numbers = #tpu.dot_dimension_numbers<[1], [0], [0], [1], [0, 0, 1, 1], [], []>} : vector<8x32xbf16>, vector<32x32xbf16>, vector<8x32xf32> -> vector<8x32xf32>
    %8 = arith.truncf %7 : vector<8x32xf32> to vector<8x32xbf16>
    %c0_5 = arith.constant 0 : index
    %c0_6 = arith.constant 0 : index
    %9 = vector.load %arg6[%c0_5, %c0_6] : memref<32x32xbf16, #tpu.memory_space<vmem>>, vector<32x32xbf16>
    %cst_7 = arith.constant dense<0.000000e+00> : vector<8x32xf32>
    %10 = tpu.matmul %8, %9, %cst_7 {dimension_numbers = #tpu.dot_dimension_numbers<[1], [0], [0], [1], [0, 0, 1, 1], [], []>} : vector<8x32xbf16>, vector<32x32xbf16>, vector<8x32xf32> -> vector<8x32xf32>
    %c8_i32 = arith.constant 8 : i32
    %11 = arith.muli %arg1, %c8_i32 : i32
    %12 = tpu.iota {dimensions = array<i32: 0>} : vector<8x1xi32>
    %13 = vector.broadcast %11 : i32 to vector<8x1xi32>
    %14 = arith.addi %13, %12 : vector<8x1xi32>
    %15 = tpu.iota {dimensions = array<i32: 1>} : vector<8x8xi32>
    %16 = vector.broadcast %14 : vector<8x1xi32> to vector<8x8xi32>
    %17 = arith.subi %15, %16 : vector<8x8xi32>
    %c3_i32 = arith.constant 3 : i32
    %18 = vector.broadcast %c3_i32 : i32 to vector<8x8xi32>
    %19 = arith.cmpi sge, %17, %18 : vector<8x8xi32>
    %c-4_i32 = arith.constant -4 : i32
    %20 = vector.broadcast %c-4_i32 : i32 to vector<8x8xi32>
    %21 = arith.cmpi sle, %17, %20 : vector<8x8xi32>
    %c1_i32 = arith.constant 1 : i32
    %22 = vector.broadcast %c1_i32 : i32 to vector<8x1xi32>
    %23 = arith.andi %14, %22 : vector<8x1xi32>
    %c0_i32_8 = arith.constant 0 : i32
    %24 = vector.broadcast %c0_i32_8 : i32 to vector<8x1xi32>
    %25 = arith.cmpi ne, %23, %24 : vector<8x1xi32>
    %c2_i32 = arith.constant 2 : i32
    %26 = vector.broadcast %c2_i32 : i32 to vector<8x1xi32>
    %27 = arith.andi %14, %26 : vector<8x1xi32>
    %c0_i32_9 = arith.constant 0 : i32
    %28 = vector.broadcast %c0_i32_9 : i32 to vector<8x1xi32>
    %29 = arith.cmpi ne, %27, %28 : vector<8x1xi32>
    %c4_i32 = arith.constant 4 : i32
    %30 = vector.broadcast %c4_i32 : i32 to vector<8x1xi32>
    %31 = arith.andi %14, %30 : vector<8x1xi32>
    %c0_i32_10 = arith.constant 0 : i32
    %32 = vector.broadcast %c0_i32_10 : i32 to vector<8x1xi32>
    %33 = arith.cmpi ne, %31, %32 : vector<8x1xi32>
    %34 = vector.extract_strided_slice %8 {offsets = [0, 0], sizes = [8, 8], strides = [1, 1]} : vector<8x32xbf16> to vector<8x8xbf16>
    %c0_11 = arith.constant 0 : index
    %c0_12 = arith.constant 0 : index
    %35 = vector.load %arg9[%c0_11, %c0_12] : memref<8x32xbf16, #tpu.memory_space<vmem>>, vector<8x8xbf16>
    %c0_13 = arith.constant 0 : index
    %c0_14 = arith.constant 0 : index
    %36 = vector.load %arg10[%c0_13, %c0_14] : memref<8x32xbf16, #tpu.memory_space<vmem>>, vector<8x8xbf16>
    %cst_15 = arith.constant dense<0.000000e+00> : vector<8x8xf32>
    %37 = tpu.matmul %34, %35, %cst_15 {dimension_numbers = #tpu.dot_dimension_numbers<[1], [1], [0], [0], [0, 0, 1, 0], [], []>} : vector<8x8xbf16>, vector<8x8xbf16>, vector<8x8xf32> -> vector<8x8xf32>
    %38 = vector.extract_strided_slice %10 {offsets = [0, 0], sizes = [8, 8], strides = [1, 1]} : vector<8x32xf32> to vector<8x8xf32>
    %39 = vector.extract_strided_slice %38 {offsets = [0, 7], sizes = [8, 1], strides = [1, 1]} : vector<8x8xf32> to vector<8x1xf32>
    %40 = vector.extract_strided_slice %38 {offsets = [0, 0], sizes = [8, 7], strides = [1, 1]} : vector<8x8xf32> to vector<8x7xf32>
    %41 = tpu.concatenate %39, %40 in 1 : vector<8x1xf32>, vector<8x7xf32> -> vector<8x8xf32>
    %42 = vector.shape_cast %25 : vector<8x1xi1> to vector<8x1xi1>
    %43 = vector.broadcast %42 : vector<8x1xi1> to vector<8x8xi1>
    %44 = arith.select %43, %41, %38 : vector<8x8xi1>, vector<8x8xf32>
    %45 = vector.extract_strided_slice %44 {offsets = [0, 6], sizes = [8, 2], strides = [1, 1]} : vector<8x8xf32> to vector<8x2xf32>
    %46 = vector.extract_strided_slice %44 {offsets = [0, 0], sizes = [8, 6], strides = [1, 1]} : vector<8x8xf32> to vector<8x6xf32>
    %47 = tpu.concatenate %45, %46 in 1 : vector<8x2xf32>, vector<8x6xf32> -> vector<8x8xf32>
    %48 = vector.shape_cast %29 : vector<8x1xi1> to vector<8x1xi1>
    %49 = vector.broadcast %48 : vector<8x1xi1> to vector<8x8xi1>
    %50 = arith.select %49, %47, %44 : vector<8x8xi1>, vector<8x8xf32>
    %51 = vector.extract_strided_slice %50 {offsets = [0, 4], sizes = [8, 4], strides = [1, 1]} : vector<8x8xf32> to vector<8x4xf32>
    %52 = vector.extract_strided_slice %50 {offsets = [0, 0], sizes = [8, 4], strides = [1, 1]} : vector<8x8xf32> to vector<8x4xf32>
    %53 = tpu.concatenate %51, %52 in 1 : vector<8x4xf32>, vector<8x4xf32> -> vector<8x8xf32>
    %54 = vector.shape_cast %33 : vector<8x1xi1> to vector<8x1xi1>
    %55 = vector.broadcast %54 : vector<8x1xi1> to vector<8x8xi1>
    %56 = arith.select %55, %53, %50 : vector<8x8xi1>, vector<8x8xf32>
    %57 = vector.extract_strided_slice %38 {offsets = [0, 3], sizes = [8, 1], strides = [1, 1]} : vector<8x8xf32> to vector<8x1xf32>
    %58 = vector.extract_strided_slice %38 {offsets = [0, 4], sizes = [8, 1], strides = [1, 1]} : vector<8x8xf32> to vector<8x1xf32>
    %59 = vector.shape_cast %58 : vector<8x1xf32> to vector<8x1xf32>
    %60 = vector.broadcast %59 : vector<8x1xf32> to vector<8x8xf32>
    %61 = arith.select %21, %60, %56 : vector<8x8xi1>, vector<8x8xf32>
    %62 = vector.shape_cast %57 : vector<8x1xf32> to vector<8x1xf32>
    %63 = vector.broadcast %62 : vector<8x1xf32> to vector<8x8xf32>
    %64 = arith.select %19, %63, %61 : vector<8x8xi1>, vector<8x8xf32>
    %65 = arith.addf %37, %64 : vector<8x8xf32>
    %cst_16 = arith.constant dense<0xFF800000> : vector<8xf32>
    %66 = vector.multi_reduction <maximumf>, %65, %cst_16 [1] : vector<8x8xf32> to vector<8xf32>
    %67 = vector.shape_cast %66 : vector<8xf32> to vector<8x1xf32>
    %68 = vector.broadcast %67 : vector<8x1xf32> to vector<8x8xf32>
    %69 = arith.subf %65, %68 : vector<8x8xf32>
    %70 = math.exp %69 : vector<8x8xf32>
    %cst_17 = arith.constant dense<0.000000e+00> : vector<8xf32>
    %71 = vector.multi_reduction <add>, %70, %cst_17 [1] : vector<8x8xf32> to vector<8xf32>
    %72 = vector.shape_cast %71 : vector<8xf32> to vector<8x1xf32>
    %73 = tpu.reciprocal %72 {approx = true} : vector<8x1xf32> -> vector<8x1xf32>
    %74 = vector.broadcast %73 : vector<8x1xf32> to vector<8x8xf32>
    %75 = arith.mulf %70, %74 : vector<8x8xf32>
    %76 = arith.truncf %75 : vector<8x8xf32> to vector<8x8xbf16>
    %cst_18 = arith.constant dense<0.000000e+00> : vector<8x8xf32>
    %77 = tpu.matmul %76, %36, %cst_18 {dimension_numbers = #tpu.dot_dimension_numbers<[1], [0], [0], [1], [0, 0, 1, 1], [], []>} : vector<8x8xbf16>, vector<8x8xbf16>, vector<8x8xf32> -> vector<8x8xf32>
    %78 = arith.truncf %77 : vector<8x8xf32> to vector<8x8xbf16>
    %c0_19 = arith.constant 0 : index
    %c0_20 = arith.constant 0 : index
    %79 = vector.load %arg11[%c0_19, %c0_20] : memref<8x32xbf16, #tpu.memory_space<vmem>>, vector<8x8xbf16>
    tpu.vector_store %arg11[%c0_19, %c0_20], %78 {strides = array<i32>} : memref<8x32xbf16, #tpu.memory_space<vmem>>, vector<8x8xbf16>,
    %80 = vector.extract_strided_slice %8 {offsets = [0, 8], sizes = [8, 8], strides = [1, 1]} : vector<8x32xbf16> to vector<8x8xbf16>
    %c0_21 = arith.constant 0 : index
    %c8 = arith.constant 8 : index
    %81 = vector.load %arg9[%c0_21, %c8] : memref<8x32xbf16, #tpu.memory_space<vmem>>, vector<8x8xbf16>
    %c0_22 = arith.constant 0 : index
    %c8_23 = arith.constant 8 : index
    %82 = vector.load %arg10[%c0_22, %c8_23] : memref<8x32xbf16, #tpu.memory_space<vmem>>, vector<8x8xbf16>
    %cst_24 = arith.constant dense<0.000000e+00> : vector<8x8xf32>
    %83 = tpu.matmul %80, %81, %cst_24 {dimension_numbers = #tpu.dot_dimension_numbers<[1], [1], [0], [0], [0, 0, 1, 0], [], []>} : vector<8x8xbf16>, vector<8x8xbf16>, vector<8x8xf32> -> vector<8x8xf32>
    %84 = vector.extract_strided_slice %10 {offsets = [0, 8], sizes = [8, 8], strides = [1, 1]} : vector<8x32xf32> to vector<8x8xf32>
    %85 = vector.extract_strided_slice %84 {offsets = [0, 7], sizes = [8, 1], strides = [1, 1]} : vector<8x8xf32> to vector<8x1xf32>
    %86 = vector.extract_strided_slice %84 {offsets = [0, 0], sizes = [8, 7], strides = [1, 1]} : vector<8x8xf32> to vector<8x7xf32>
    %87 = tpu.concatenate %85, %86 in 1 : vector<8x1xf32>, vector<8x7xf32> -> vector<8x8xf32>
    %88 = vector.shape_cast %25 : vector<8x1xi1> to vector<8x1xi1>
    %89 = vector.broadcast %88 : vector<8x1xi1> to vector<8x8xi1>
    %90 = arith.select %89, %87, %84 : vector<8x8xi1>, vector<8x8xf32>
    %91 = vector.extract_strided_slice %90 {offsets = [0, 6], sizes = [8, 2], strides = [1, 1]} : vector<8x8xf32> to vector<8x2xf32>
    %92 = vector.extract_strided_slice %90 {offsets = [0, 0], sizes = [8, 6], strides = [1, 1]} : vector<8x8xf32> to vector<8x6xf32>
    %93 = tpu.concatenate %91, %92 in 1 : vector<8x2xf32>, vector<8x6xf32> -> vector<8x8xf32>
    %94 = vector.shape_cast %29 : vector<8x1xi1> to vector<8x1xi1>
    %95 = vector.broadcast %94 : vector<8x1xi1> to vector<8x8xi1>
    %96 = arith.select %95, %93, %90 : vector<8x8xi1>, vector<8x8xf32>
    %97 = vector.extract_strided_slice %96 {offsets = [0, 4], sizes = [8, 4], strides = [1, 1]} : vector<8x8xf32> to vector<8x4xf32>
    %98 = vector.extract_strided_slice %96 {offsets = [0, 0], sizes = [8, 4], strides = [1, 1]} : vector<8x8xf32> to vector<8x4xf32>
    %99 = tpu.concatenate %97, %98 in 1 : vector<8x4xf32>, vector<8x4xf32> -> vector<8x8xf32>
    %100 = vector.shape_cast %33 : vector<8x1xi1> to vector<8x1xi1>
    %101 = vector.broadcast %100 : vector<8x1xi1> to vector<8x8xi1>
    %102 = arith.select %101, %99, %96 : vector<8x8xi1>, vector<8x8xf32>
    %103 = vector.extract_strided_slice %84 {offsets = [0, 3], sizes = [8, 1], strides = [1, 1]} : vector<8x8xf32> to vector<8x1xf32>
    %104 = vector.extract_strided_slice %84 {offsets = [0, 4], sizes = [8, 1], strides = [1, 1]} : vector<8x8xf32> to vector<8x1xf32>
    %105 = vector.shape_cast %104 : vector<8x1xf32> to vector<8x1xf32>
    %106 = vector.broadcast %105 : vector<8x1xf32> to vector<8x8xf32>
    %107 = arith.select %21, %106, %102 : vector<8x8xi1>, vector<8x8xf32>
    %108 = vector.shape_cast %103 : vector<8x1xf32> to vector<8x1xf32>
    %109 = vector.broadcast %108 : vector<8x1xf32> to vector<8x8xf32>
    %110 = arith.select %19, %109, %107 : vector<8x8xi1>, vector<8x8xf32>
    %111 = arith.addf %83, %110 : vector<8x8xf32>
    %cst_25 = arith.constant dense<0xFF800000> : vector<8xf32>
    %112 = vector.multi_reduction <maximumf>, %111, %cst_25 [1] : vector<8x8xf32> to vector<8xf32>
    %113 = vector.shape_cast %112 : vector<8xf32> to vector<8x1xf32>
    %114 = vector.broadcast %113 : vector<8x1xf32> to vector<8x8xf32>
    %115 = arith.subf %111, %114 : vector<8x8xf32>
    %116 = math.exp %115 : vector<8x8xf32>
    %cst_26 = arith.constant dense<0.000000e+00> : vector<8xf32>
    %117 = vector.multi_reduction <add>, %116, %cst_26 [1] : vector<8x8xf32> to vector<8xf32>
    %118 = vector.shape_cast %117 : vector<8xf32> to vector<8x1xf32>
    %119 = tpu.reciprocal %118 {approx = true} : vector<8x1xf32> -> vector<8x1xf32>
    %120 = vector.broadcast %119 : vector<8x1xf32> to vector<8x8xf32>
    %121 = arith.mulf %116, %120 : vector<8x8xf32>
    %122 = arith.truncf %121 : vector<8x8xf32> to vector<8x8xbf16>
    %cst_27 = arith.constant dense<0.000000e+00> : vector<8x8xf32>
    %123 = tpu.matmul %122, %82, %cst_27 {dimension_numbers = #tpu.dot_dimension_numbers<[1], [0], [0], [1], [0, 0, 1, 1], [], []>} : vector<8x8xbf16>, vector<8x8xbf16>, vector<8x8xf32> -> vector<8x8xf32>
    %124 = arith.truncf %123 : vector<8x8xf32> to vector<8x8xbf16>
    %c0_28 = arith.constant 0 : index
    %c8_29 = arith.constant 8 : index
    %125 = vector.load %arg11[%c0_28, %c8_29] : memref<8x32xbf16, #tpu.memory_space<vmem>>, vector<8x8xbf16>
    tpu.vector_store %arg11[%c0_28, %c8_29], %124 {strides = array<i32>} : memref<8x32xbf16, #tpu.memory_space<vmem>>, vector<8x8xbf16>,
    %126 = vector.extract_strided_slice %8 {offsets = [0, 16], sizes = [8, 8], strides = [1, 1]} : vector<8x32xbf16> to vector<8x8xbf16>
    %c0_30 = arith.constant 0 : index
    %c16 = arith.constant 16 : index
    %127 = vector.load %arg9[%c0_30, %c16] : memref<8x32xbf16, #tpu.memory_space<vmem>>, vector<8x8xbf16>
    %c0_31 = arith.constant 0 : index
    %c16_32 = arith.constant 16 : index
    %128 = vector.load %arg10[%c0_31, %c16_32] : memref<8x32xbf16, #tpu.memory_space<vmem>>, vector<8x8xbf16>
    %cst_33 = arith.constant dense<0.000000e+00> : vector<8x8xf32>
    %129 = tpu.matmul %126, %127, %cst_33 {dimension_numbers = #tpu.dot_dimension_numbers<[1], [1], [0], [0], [0, 0, 1, 0], [], []>} : vector<8x8xbf16>, vector<8x8xbf16>, vector<8x8xf32> -> vector<8x8xf32>
    %130 = vector.extract_strided_slice %10 {offsets = [0, 16], sizes = [8, 8], strides = [1, 1]} : vector<8x32xf32> to vector<8x8xf32>
    %131 = vector.extract_strided_slice %130 {offsets = [0, 7], sizes = [8, 1], strides = [1, 1]} : vector<8x8xf32> to vector<8x1xf32>
    %132 = vector.extract_strided_slice %130 {offsets = [0, 0], sizes = [8, 7], strides = [1, 1]} : vector<8x8xf32> to vector<8x7xf32>
    %133 = tpu.concatenate %131, %132 in 1 : vector<8x1xf32>, vector<8x7xf32> -> vector<8x8xf32>
    %134 = vector.shape_cast %25 : vector<8x1xi1> to vector<8x1xi1>
    %135 = vector.broadcast %134 : vector<8x1xi1> to vector<8x8xi1>
    %136 = arith.select %135, %133, %130 : vector<8x8xi1>, vector<8x8xf32>
    %137 = vector.extract_strided_slice %136 {offsets = [0, 6], sizes = [8, 2], strides = [1, 1]} : vector<8x8xf32> to vector<8x2xf32>
    %138 = vector.extract_strided_slice %136 {offsets = [0, 0], sizes = [8, 6], strides = [1, 1]} : vector<8x8xf32> to vector<8x6xf32>
    %139 = tpu.concatenate %137, %138 in 1 : vector<8x2xf32>, vector<8x6xf32> -> vector<8x8xf32>
    %140 = vector.shape_cast %29 : vector<8x1xi1> to vector<8x1xi1>
    %141 = vector.broadcast %140 : vector<8x1xi1> to vector<8x8xi1>
    %142 = arith.select %141, %139, %136 : vector<8x8xi1>, vector<8x8xf32>
    %143 = vector.extract_strided_slice %142 {offsets = [0, 4], sizes = [8, 4], strides = [1, 1]} : vector<8x8xf32> to vector<8x4xf32>
    %144 = vector.extract_strided_slice %142 {offsets = [0, 0], sizes = [8, 4], strides = [1, 1]} : vector<8x8xf32> to vector<8x4xf32>
    %145 = tpu.concatenate %143, %144 in 1 : vector<8x4xf32>, vector<8x4xf32> -> vector<8x8xf32>
    %146 = vector.shape_cast %33 : vector<8x1xi1> to vector<8x1xi1>
    %147 = vector.broadcast %146 : vector<8x1xi1> to vector<8x8xi1>
    %148 = arith.select %147, %145, %142 : vector<8x8xi1>, vector<8x8xf32>
    %149 = vector.extract_strided_slice %130 {offsets = [0, 3], sizes = [8, 1], strides = [1, 1]} : vector<8x8xf32> to vector<8x1xf32>
    %150 = vector.extract_strided_slice %130 {offsets = [0, 4], sizes = [8, 1], strides = [1, 1]} : vector<8x8xf32> to vector<8x1xf32>
    %151 = vector.shape_cast %150 : vector<8x1xf32> to vector<8x1xf32>
    %152 = vector.broadcast %151 : vector<8x1xf32> to vector<8x8xf32>
    %153 = arith.select %21, %152, %148 : vector<8x8xi1>, vector<8x8xf32>
    %154 = vector.shape_cast %149 : vector<8x1xf32> to vector<8x1xf32>
    %155 = vector.broadcast %154 : vector<8x1xf32> to vector<8x8xf32>
    %156 = arith.select %19, %155, %153 : vector<8x8xi1>, vector<8x8xf32>
    %157 = arith.addf %129, %156 : vector<8x8xf32>
    %cst_34 = arith.constant dense<0xFF800000> : vector<8xf32>
    %158 = vector.multi_reduction <maximumf>, %157, %cst_34 [1] : vector<8x8xf32> to vector<8xf32>
    %159 = vector.shape_cast %158 : vector<8xf32> to vector<8x1xf32>
    %160 = vector.broadcast %159 : vector<8x1xf32> to vector<8x8xf32>
    %161 = arith.subf %157, %160 : vector<8x8xf32>
    %162 = math.exp %161 : vector<8x8xf32>
    %cst_35 = arith.constant dense<0.000000e+00> : vector<8xf32>
    %163 = vector.multi_reduction <add>, %162, %cst_35 [1] : vector<8x8xf32> to vector<8xf32>
    %164 = vector.shape_cast %163 : vector<8xf32> to vector<8x1xf32>
    %165 = tpu.reciprocal %164 {approx = true} : vector<8x1xf32> -> vector<8x1xf32>
    %166 = vector.broadcast %165 : vector<8x1xf32> to vector<8x8xf32>
    %167 = arith.mulf %162, %166 : vector<8x8xf32>
    %168 = arith.truncf %167 : vector<8x8xf32> to vector<8x8xbf16>
    %cst_36 = arith.constant dense<0.000000e+00> : vector<8x8xf32>
    %169 = tpu.matmul %168, %128, %cst_36 {dimension_numbers = #tpu.dot_dimension_numbers<[1], [0], [0], [1], [0, 0, 1, 1], [], []>} : vector<8x8xbf16>, vector<8x8xbf16>, vector<8x8xf32> -> vector<8x8xf32>
    %170 = arith.truncf %169 : vector<8x8xf32> to vector<8x8xbf16>
    %c0_37 = arith.constant 0 : index
    %c16_38 = arith.constant 16 : index
    %171 = vector.load %arg11[%c0_37, %c16_38] : memref<8x32xbf16, #tpu.memory_space<vmem>>, vector<8x8xbf16>
    tpu.vector_store %arg11[%c0_37, %c16_38], %170 {strides = array<i32>} : memref<8x32xbf16, #tpu.memory_space<vmem>>, vector<8x8xbf16>,
    %172 = vector.extract_strided_slice %8 {offsets = [0, 24], sizes = [8, 8], strides = [1, 1]} : vector<8x32xbf16> to vector<8x8xbf16>
    %c0_39 = arith.constant 0 : index
    %c24 = arith.constant 24 : index
    %173 = vector.load %arg9[%c0_39, %c24] : memref<8x32xbf16, #tpu.memory_space<vmem>>, vector<8x8xbf16>
    %c0_40 = arith.constant 0 : index
    %c24_41 = arith.constant 24 : index
    %174 = vector.load %arg10[%c0_40, %c24_41] : memref<8x32xbf16, #tpu.memory_space<vmem>>, vector<8x8xbf16>
    %cst_42 = arith.constant dense<0.000000e+00> : vector<8x8xf32>
    %175 = tpu.matmul %172, %173, %cst_42 {dimension_numbers = #tpu.dot_dimension_numbers<[1], [1], [0], [0], [0, 0, 1, 0], [], []>} : vector<8x8xbf16>, vector<8x8xbf16>, vector<8x8xf32> -> vector<8x8xf32>
    %176 = vector.extract_strided_slice %10 {offsets = [0, 24], sizes = [8, 8], strides = [1, 1]} : vector<8x32xf32> to vector<8x8xf32>
    %177 = vector.extract_strided_slice %176 {offsets = [0, 7], sizes = [8, 1], strides = [1, 1]} : vector<8x8xf32> to vector<8x1xf32>
    %178 = vector.extract_strided_slice %176 {offsets = [0, 0], sizes = [8, 7], strides = [1, 1]} : vector<8x8xf32> to vector<8x7xf32>
    %179 = tpu.concatenate %177, %178 in 1 : vector<8x1xf32>, vector<8x7xf32> -> vector<8x8xf32>
    %180 = vector.shape_cast %25 : vector<8x1xi1> to vector<8x1xi1>
    %181 = vector.broadcast %180 : vector<8x1xi1> to vector<8x8xi1>
    %182 = arith.select %181, %179, %176 : vector<8x8xi1>, vector<8x8xf32>
    %183 = vector.extract_strided_slice %182 {offsets = [0, 6], sizes = [8, 2], strides = [1, 1]} : vector<8x8xf32> to vector<8x2xf32>
    %184 = vector.extract_strided_slice %182 {offsets = [0, 0], sizes = [8, 6], strides = [1, 1]} : vector<8x8xf32> to vector<8x6xf32>
    %185 = tpu.concatenate %183, %184 in 1 : vector<8x2xf32>, vector<8x6xf32> -> vector<8x8xf32>
    %186 = vector.shape_cast %29 : vector<8x1xi1> to vector<8x1xi1>
    %187 = vector.broadcast %186 : vector<8x1xi1> to vector<8x8xi1>
    %188 = arith.select %187, %185, %182 : vector<8x8xi1>, vector<8x8xf32>
    %189 = vector.extract_strided_slice %188 {offsets = [0, 4], sizes = [8, 4], strides = [1, 1]} : vector<8x8xf32> to vector<8x4xf32>
    %190 = vector.extract_strided_slice %188 {offsets = [0, 0], sizes = [8, 4], strides = [1, 1]} : vector<8x8xf32> to vector<8x4xf32>
    %191 = tpu.concatenate %189, %190 in 1 : vector<8x4xf32>, vector<8x4xf32> -> vector<8x8xf32>
    %192 = vector.shape_cast %33 : vector<8x1xi1> to vector<8x1xi1>
    %193 = vector.broadcast %192 : vector<8x1xi1> to vector<8x8xi1>
    %194 = arith.select %193, %191, %188 : vector<8x8xi1>, vector<8x8xf32>
    %195 = vector.extract_strided_slice %176 {offsets = [0, 3], sizes = [8, 1], strides = [1, 1]} : vector<8x8xf32> to vector<8x1xf32>
    %196 = vector.extract_strided_slice %176 {offsets = [0, 4], sizes = [8, 1], strides = [1, 1]} : vector<8x8xf32> to vector<8x1xf32>
    %197 = vector.shape_cast %196 : vector<8x1xf32> to vector<8x1xf32>
    %198 = vector.broadcast %197 : vector<8x1xf32> to vector<8x8xf32>
    %199 = arith.select %21, %198, %194 : vector<8x8xi1>, vector<8x8xf32>
    %200 = vector.shape_cast %195 : vector<8x1xf32> to vector<8x1xf32>
    %201 = vector.broadcast %200 : vector<8x1xf32> to vector<8x8xf32>
    %202 = arith.select %19, %201, %199 : vector<8x8xi1>, vector<8x8xf32>
    %203 = arith.addf %175, %202 : vector<8x8xf32>
    %cst_43 = arith.constant dense<0xFF800000> : vector<8xf32>
    %204 = vector.multi_reduction <maximumf>, %203, %cst_43 [1] : vector<8x8xf32> to vector<8xf32>
    %205 = vector.shape_cast %204 : vector<8xf32> to vector<8x1xf32>
    %206 = vector.broadcast %205 : vector<8x1xf32> to vector<8x8xf32>
    %207 = arith.subf %203, %206 : vector<8x8xf32>
    %208 = math.exp %207 : vector<8x8xf32>
    %cst_44 = arith.constant dense<0.000000e+00> : vector<8xf32>
    %209 = vector.multi_reduction <add>, %208, %cst_44 [1] : vector<8x8xf32> to vector<8xf32>
    %210 = vector.shape_cast %209 : vector<8xf32> to vector<8x1xf32>
    %211 = tpu.reciprocal %210 {approx = true} : vector<8x1xf32> -> vector<8x1xf32>
    %212 = vector.broadcast %211 : vector<8x1xf32> to vector<8x8xf32>
    %213 = arith.mulf %208, %212 : vector<8x8xf32>
    %214 = arith.truncf %213 : vector<8x8xf32> to vector<8x8xbf16>
    %cst_45 = arith.constant dense<0.000000e+00> : vector<8x8xf32>
    %215 = tpu.matmul %214, %174, %cst_45 {dimension_numbers = #tpu.dot_dimension_numbers<[1], [0], [0], [1], [0, 0, 1, 1], [], []>} : vector<8x8xbf16>, vector<8x8xbf16>, vector<8x8xf32> -> vector<8x8xf32>
    %216 = arith.truncf %215 : vector<8x8xf32> to vector<8x8xbf16>
    %c0_46 = arith.constant 0 : index
    %c24_47 = arith.constant 24 : index
    %217 = vector.load %arg11[%c0_46, %c24_47] : memref<8x32xbf16, #tpu.memory_space<vmem>>, vector<8x8xbf16>
    tpu.vector_store %arg11[%c0_46, %c24_47], %216 {strides = array<i32>} : memref<8x32xbf16, #tpu.memory_space<vmem>>, vector<8x8xbf16>,
    %c0_48 = arith.constant 0 : index
    %c0_49 = arith.constant 0 : index
    %218 = vector.load %arg11[%c0_48, %c0_49] : memref<8x32xbf16, #tpu.memory_space<vmem>>, vector<8x32xbf16>
    %c0_50 = arith.constant 0 : index
    %c0_51 = arith.constant 0 : index
    %219 = vector.load %arg7[%c0_50, %c0_51] : memref<32x32xbf16, #tpu.memory_space<vmem>>, vector<32x32xbf16>
    %cst_52 = arith.constant dense<0.000000e+00> : vector<8x32xf32>
    %220 = tpu.matmul %218, %219, %cst_52 {dimension_numbers = #tpu.dot_dimension_numbers<[1], [0], [0], [1], [0, 0, 1, 1], [], []>} : vector<8x32xbf16>, vector<32x32xbf16>, vector<8x32xf32> -> vector<8x32xf32>
    %c0_53 = arith.constant 0 : index
    %c0_54 = arith.constant 0 : index
    %c0_55 = arith.constant 0 : index
    %221 = vector.load %arg8[%c0_53, %c0_54, %c0_55] : memref<1x8x32xf32, #tpu.memory_space<vmem>>, vector<1x8x32xf32>
    %222 = vector.shape_cast %221 : vector<1x8x32xf32> to vector<8x32xf32>
    %223 = vector.shape_cast %220 : vector<8x32xf32> to vector<1x8x32xf32>
    tpu.vector_store %arg8[%c0_53, %c0_54, %c0_55], %223 {strides = array<i32>} : memref<1x8x32xf32, #tpu.memory_space<vmem>>, vector<1x8x32xf32>,
    return
  }
  func.func @transform_0(%arg0: i32, %arg1: i32) -> (i32, i32, i32) {
    %c0_i32 = arith.constant 0 : i32
    %c0_i32_0 = arith.constant 0 : i32
    return %arg0, %arg1, %c0_i32 : i32, i32, i32
  }
  func.func @transform_1(%arg0: i32, %arg1: i32) -> (i32, i32, i32) {
    %c0_i32 = arith.constant 0 : i32
    %c0_i32_0 = arith.constant 0 : i32
    %c0_i32_1 = arith.constant 0 : i32
    return %arg0, %c0_i32, %c0_i32_0 : i32, i32, i32
  }
  func.func @transform_2(%arg0: i32, %arg1: i32) -> (i32, i32) {
    %c0_i32 = arith.constant 0 : i32
    %c0_i32_0 = arith.constant 0 : i32
    %c0_i32_1 = arith.constant 0 : i32
    return %c0_i32, %c0_i32_0 : i32, i32
  }
  func.func @transform_3(%arg0: i32, %arg1: i32) -> (i32, i32) {
    %c0_i32 = arith.constant 0 : i32
    %c0_i32_0 = arith.constant 0 : i32
    %c0_i32_1 = arith.constant 0 : i32
    return %c0_i32, %c0_i32_0 : i32, i32
  }
  func.func @transform_4(%arg0: i32, %arg1: i32) -> (i32, i32) {
    %c0_i32 = arith.constant 0 : i32
    %c0_i32_0 = arith.constant 0 : i32
    %c0_i32_1 = arith.constant 0 : i32
    return %c0_i32, %c0_i32_0 : i32, i32
  }
  func.func @transform_5(%arg0: i32, %arg1: i32) -> (i32, i32) {
    %c0_i32 = arith.constant 0 : i32
    %c0_i32_0 = arith.constant 0 : i32
    %c0_i32_1 = arith.constant 0 : i32
    return %c0_i32, %c0_i32_0 : i32, i32
  }
  func.func @transform_6(%arg0: i32, %arg1: i32) -> (i32, i32, i32) {
    %c0_i32 = arith.constant 0 : i32
    %c0_i32_0 = arith.constant 0 : i32
    return %arg0, %arg1, %c0_i32 : i32, i32, i32
  }
}

</mosaic_0001>

<bundles_post_ra>
// kernel: self_attention_pallas.1
= control target key start
LH: loop header
LB: loop body
LE: loop exit
PB: predicated region body
PF: predicated region fallthrough
CT: control target
= control target key end

     0   :  { %11 = vsyncpa [#allocation6], 0  ;;  %s2049_s0 = inlined_call_operand.vmem [shape: f32[2,8,32], index: 0, kind: input, shape index: {}, may-alias: {0,1}]   ;;  %s2050_s1 = inlined_call_operand.vmem [shape: f32[2,8,32], index: 1, kind: input, shape index: {}, may-alias: {0,1}]   ;;  %s2051_s2 = inlined_call_operand.vmem [shape: bf16[32,32], index: 2, kind: input, shape index: {}]   ;;  %s2052_s3 = inlined_call_operand.vmem [shape: bf16[32,64], index: 3, kind: input, shape index: {}]   ;;  %s2053_s4 = inlined_call_operand.vmem [shape: bf16[32,32], index: 4, kind: input, shape index: {}]   ;;  %s2054_s5 = inlined_call_operand.vmem [shape: bf16[32,32], index: 5, kind: input, shape index: {}]   ;;  %s2055_s6 = inlined_call_operand.hbm [shape: f32[2,8,32], index: 6, kind: output, shape index: {}]  }
   0x1   :  { %13 = vsyncpa [#allocation6 + $0x1], 0  ;;  %s1724_s21 = smov 0   ;;  %s1726_s22 = smov 0  }
   0x2   :  { %s1728_s23 = smov 0   ;;  %s1730_s24 = smov 0  }
   0x3   :  { %s1732_s25 = smov 0   ;;  %s1734_s26 = smov 0  }
   0x4 LB: > { %s1309_s27 = sadd.s32 4294967295, %s1660_s26   ;;  %s1310_s28 = sadd.s32 4294967294, %s1660_s26   ;;  %s1660_s26 = sphi %s1734_s26, %s19_s26   ;;  %s1656_s25 = sphi %s1732_s25, %s2068_s25   ;;  %s1652_s24 = sphi %s1730_s24, %s2067_s24   ;;  %s1648_s23 = sphi %s1728_s23, %s2066_s23   ;;  %s1644_s22 = sphi %s1726_s22, %s2065_s22   ;;  %s1640_s21 = sphi %s1724_s21, %s2064_s21  }
   0x5   : > { %s31_s29 = sadd.s32 1, %s1656_s25  ;;  %s178_s30 = sadd.s32 1, %s1648_s23 }
   0x6   : > { %p33_p0 = scmp.ge.s32.totalorder %s31_s29, 2  ;;  %p188_p1 = scmp.ne.s32.totalorder %s1648_s23, %s1644_s22 }
   0x7   : > { %p189_p2 = scmp.eq.s32.totalorder %s1309_s27, 1  ;;  %p194_p3 = scmp.ne.s32.totalorder %s1644_s22, %s1640_s21 }
   0x8   : > { %s2070_s29 = smov (%p33_p0, %s31_s29), 0  ;;  %p195_p5 = scmp.eq.s32.totalorder %s1310_s28, 1 }
   0x9   : > { %p1764_p4 = por %p189_p2, %p188_p1  ;;  %s173_s8 = ssub.s32 %s1656_s25, %s2070_s29 }
   0xa   : > { %p1313_p6 = scmp.ge.s32.totalorder %s1660_s26, 1  ;;  %p176_p7 = scmp.eq.s32.totalorder %s173_s8, 0 }
   0xb   : > { %p1771_p8 = por %p195_p5, %p194_p3  ;;  %p242_p9 = scmp.lt.s32.totalorder %s1660_s26, 3 }
   0xc   : > { %s1777_s10 = scalar_select %p176_p7, %s1648_s23, %s178_s30  }
   0xd   : > { %p243_p10 = pnand %p1313_p6, %p242_p9 }
   0xe   : > { %v1552_v0 = vld [vmem:[%s2052_s3] sm:$0xff] (!%p243_p10)   ;;  %v1662_v1 = vmov (!%p243_p10), 0.0   ;;  %v1554_v3 = vld [vmem:[%s2052_s3 + $0x8] sm:$0xff] (!%p243_p10)   ;;  %vm1663_vm0 = vmmov (!%p243_p10), 0   ;;  %p278_p11 = scmp.lt.s32.totalorder (!%p243_p10), %s1652_s24, 1  ;;  %vm312_vm1 = vcmask (!%p243_p10), 261120   ;;  %v489_v45 = vlaneseq (!%p243_p10) }
   0xf   : > { %246 = sbr.rel (%p243_p10) target bundleno = 1733 (0x6c5), region = 44  ;;  %1383 = vmatprep.subr.bf16.mxu0 (!%p243_p10), %v1662_v1  ;;  %1391 = vmatprep.subr.bf16.mxu1 (!%p243_p10), %v1662_v1  ;;  %v1553_v2 = vld [vmem:[%s2051_s2] sm:$0xff] (!%p243_p10)   ;;  %v1555_v4 = vld [vmem:[%s2051_s2 + $0x8] sm:$0xff] (!%p243_p10)   ;;  %vm357_vm2 = vcmask (!%p243_p10), 257024   ;;  %vm552_vm3 = vcmask (!%p243_p10), 64512   ;;  %s1664_s17 = smov (!%p243_p10), 112  }
  0x10   : > { %1384 = vmatpush3.bf16.msra.mxu0 (!%p243_p10), %v1552_v0  ;;  %1387 = vmatprep.mubr.msk.bf16.mxu0 (!%p243_p10), %vm1663_vm0, %v1662_v1  ;;  %v1556_v7 = vld [vmem:[%s2053_s4] sm:$0xff] (!%p243_p10)   ;;  %v1557_v10 = vld [vmem:[%s2053_s4 + $0x8] sm:$0xff] (!%p243_p10)   ;;  %s1665_s18 = smov (!%p243_p10), 120   ;;  %s1668_s27 = smov (!%p243_p10), 121   ;;  %v1669_v39 = vmov (!%p243_p10), 3   ;;  %v1670_v40 = vmov (!%p243_p10), 4  }
  0x11   : > { %1392 = vmatpush3.bf16.msra.mxu1 (!%p243_p10), %v1553_v2  ;;  %1385 = vmatprep.subr.bf16.mxu0 (!%p243_p10), %v1662_v1  ;;  %s1671_s28 = smov (!%p243_p10), 113   ;;  %s1673_s8 = smov (!%p243_p10), 97   ;;  %v1872_v46 = vshrl.u32 (!%p243_p10), %v489_v45, 7  ;;  %vm513_vm4 = vcmask (!%p243_p10), 7168   ;;  %vm525_vm6 = vcmask (!%p243_p10), 15360   ;;  %vm537_vm8 = vcmask (!%p243_p10), 31744  }
  0x12   : > { %1393 = vmatprep.subr.bf16.mxu1 (!%p243_p10), %v1662_v1  ;;  %1395 = vmatprep.mubr.msk.bf16.mxu1 (!%p243_p10), %vm1663_vm0, %v1662_v1  ;;  %s1674_s11 = smov (!%p243_p10), 2   ;;  %s1679_s13 = smov (!%p243_p10), 4   ;;  %vm613_vm12 = vcmask (!%p243_p10), 1043456   ;;  %vm658_vm13 = vcmask (!%p243_p10), 60416   ;;  %vm822_vm14 = vcmask (!%p243_p10), 126016   ;;  %vm985_vm15 = vcmask (!%p243_p10), 191616  }
  0x13   : > { %1545 = vset.pattern.permute.xlu1 (!%p243_p10), %v1669_v39  ;;  %1544 = vset.pattern.permute.xlu0 (!%p243_p10), %v1670_v40  ;;  %v498_v47 = vand.u32 (!%p243_p10), 1, %v1872_v46  ;;  %s1680_s14 = smov (!%p243_p10), 124   ;;  %s1684_s15 = smov (!%p243_p10), 96  }
  0x14   : > { %1386 = vmatpush3.bf16.msra.mxu0 (!%p243_p10), %v1554_v3  ;;  %s1685_s16 = smov (!%p243_p10), 8  }
  0x15   : > { %1394 = vmatpush3.bf16.msra.mxu1 (!%p243_p10), %v1555_v4  ;;  %1399 = vmatprep.subr.bf16.mxu0 (!%p243_p10), %v1662_v1  ;;  %vm1875_vm5 = vcmp.ne.s32.totalorder (!%p243_p10), %v498_v47, 0 }
  0x16   : > { %s279_s19 = scalar_select %p278_p11, %s1652_s24, 1  ;;  %1407 = vmatprep.subr.bf16.mxu1 %v1662_v1 }
  0x18   : > { %s1315_s20 = sshll.u32 %s279_s19, 3  ;;  %s1666_s19 = smov 104  }
  0x19   : > { %s288_s30 = scalar_lea.vmem %s2050_s1, %s1315_s20  ;;  %s284_s12 = scalar_lea.vmem %s2049_s0, %s1315_s20 }
  0x1a   : > { %v294_v5 = vld [vmem:[%s288_s30] sm:$0xff]  ;;  %s1667_s20 = smov 1   ;;  %s1672_s30 = smov 105  }
  0x1b   : > { %v366_v6 = vld [vmem:[%s284_s12] sm:$0xff]  ;;  %v295_v8 = vpack.c.bf16 %v294_v5, %v294_v5  ;;  %s1675_s12 = smov 122  }
  0x1c   : > { %v367_v9 = vpack.c.bf16 %v366_v6, %v366_v6  ;;  %v1676_v6 = vmov 12  }
  0x1d   : > { %1388 = vmatmul.mubr.msk.bf16.vlgmr.msra.gmra.mrb[0].mxu0 %vm312_vm1, %v295_v8 }
  0x1e   : > { %1396 = vmatmul.mubr.msk.bf16.vlgmr.msra.gmra.mrb[0].mxu1 %vm312_vm1, %v367_v9  ;;  %1400 = vmatpush3.bf16.msra.mxu0 %v1556_v7  ;;  %v1677_v7 = vmov 11  }
  0x1f   : > { %1403 = vmatprep.mubr.msk.bf16.mxu0 %vm1663_vm0, %v1662_v1  ;;  %1401 = vmatprep.subr.bf16.mxu0 %v1662_v1 }
  0x20   : > { %1409 = vmatprep.mubr.msk.bf16.mxu1 %vm1663_vm0, %v1662_v1 }
  0x22   : > { %1402 = vmatpush3.bf16.msra.mxu0 %v1557_v10 }
  0x23   : > { %1413 = vmatprep.subr.bf16.mxu0 %v1662_v1 }
  0xf0   : > { %v350_v11 = vpop.f32.mrb[0].mxu0 }
  0xf1   : > { %v422_v12 = vpop.f32.mrb[0].mxu1  ;;  %v1823_v13 = vpack.c.bf16 %v350_v11, %v350_v11  ;;  %v1389_v16 = vpop.f32.mrb[1].mxu0  ;;  %v1678_v11 = vmov 19  }
  0xf2   : > { %v428_v14 = vpack.c.bf16 %v422_v12, %v422_v12  ;;  %v1397_v15 = vpop.f32.mrb[1].mxu1  ;;  %v353_v18 = vpop.f32.mrb[2].mxu0 }
  0xf3   : > { %v425_v17 = vpop.f32.mrb[2].mxu1  ;;  %358 = vst.msk [vmem:[#allocation2] sm:$0xf] %vm357_vm2, %v1823_v13  ;;  %v1390_v20 = vpop.f32.mrb[3].mxu0  ;;  %v500_v18 = vand.u32 2, %v1872_v46 }
  0xf4   : > { %v1398_v19 = vpop.f32.mrb[3].mxu1  ;;  %1404 = vmatmul.mubr.msk.bf16.vlgmr.msra.gmra.mrb[4].mxu0 %vm312_vm1, %v428_v14 }
  0xf5   : > { %1415 = vmatprep.mubr.msk.bf16.mxu0 %vm1663_vm0, %v1662_v1  ;;  %vm1902_vm7 = vcmp.ne.s32.totalorder %v500_v18, 0 }
  0xfa   : > { %v504_v21 = vld [vmem:[#allocation2] sm:$0xf] }
  0xfb   : > { %v1558_v22 = vld [vmem:[#allocation2] ss:$0 sps:$4 sm:$0xff]   ;;  %v556_v23 = vsel %vm552_vm3, %v504_v21, 0 }
  0xfc   : > { %v1559_v24 = vld [vmem:[#allocation2] ss:$0 sps:$4 sm:$0xff]   ;;  %1408 = vmatpush3.bf16.xpose.msra.mxu1 %v556_v23  ;;  %867 = vrot.lane.b32.xlu1 %v1558_v22, %s1664_s17 }
  0xfd   : > { %704 = vrot.lane.b32.xlu0 %v1559_v24, %s1665_s18  ;;  %1419 = vmatprep.subr.bf16.mxu1 %v1662_v1  ;;  %v1560_v25 = vld [vmem:[#allocation2] ss:$0 sps:$4 sm:$0xff]  }
 0x100   : > { %862 = vrot.lane.b32.xlu1 %v428_v14, %s1664_s17 }
 0x101   : > { %699 = vrot.lane.b32.xlu0 %v428_v14, %s1665_s18 }
 0x103   : > { %1410 = vmatmul.mubr.msk.bf16.vlgmr.msra.gmra.mrb[4].mxu1 %vm552_vm3, %v428_v14 }
 0x104   : > { %1025 = vrot.lane.b32.xlu1 %v428_v14, %s1666_s19  ;;  %1421 = vmatprep.mubr.msk.bf16.mxu1 %vm1663_vm0, %v1662_v1 }
 0x105   : > { %1030 = vrot.lane.b32.xlu0 %v1560_v25, %s1666_s19 }
 0x16e   : > { %v868_v28 = vpop.permute.xlu1 %867 }
 0x16f   : > { %v705_v26 = vpop.permute.xlu0 %704  ;;  %v873_v29 = vsel %vm552_vm3, %v868_v28, 0 }
 0x170   : > { %v710_v27 = vsel %vm552_vm3, %v705_v26, 0 }
 0x171   : > { %1420 = vmatpush3.bf16.xpose.msra.mxu1 %v710_v27 }
 0x172   : > { %1431 = vmatprep.subr.bf16.mxu1 %v1662_v1  ;;  %v863_v33 = vpop.permute.xlu1 %862 }
 0x173   : > { %v700_v30 = vpop.permute.xlu0 %699 }
 0x176   : > { %v1026_v34 = vpop.permute.xlu1 %1025 }
 0x177   : > { %v1031_v31 = vpop.permute.xlu0 %1030 }
 0x178   : > { %1422 = vmatmul.mubr.msk.bf16.vlgmr.msra.gmra.mrb[8].mxu1 %vm552_vm3, %v700_v30  ;;  %v1036_v32 = vsel %vm552_vm3, %v1031_v31, 0  ;;  %v1681_v30 = vmov 20  }
 0x179   : > { %1432 = vmatpush3.bf16.xpose.msra.mxu1 %v873_v29  ;;  %1433 = vmatprep.mubr.msk.bf16.mxu1 %vm1663_vm0, %v1662_v1 }
 0x17a   : > { %1443 = vmatprep.subr.bf16.mxu1 %v1662_v1 }
 0x180   : > { %1434 = vmatmul.mubr.msk.bf16.vlgmr.msra.gmra.mrb[12].mxu1 %vm552_vm3, %v863_v33 }
 0x181   : > { %1444 = vmatpush3.bf16.xpose.msra.mxu1 %v1036_v32  ;;  %1445 = vmatprep.mubr.msk.bf16.mxu1 %vm1663_vm0, %v1662_v1  ;;  %v1682_v32 = vmov 28  }
 0x182   : > { %1455 = vmatprep.subr.bf16.mxu1 %v1662_v1 }
 0x188   : > { %1446 = vmatmul.mubr.msk.bf16.vlgmr.msra.gmra.mrb[16].mxu1 %vm552_vm3, %v1026_v34  ;;  %v1683_v34 = vmov 27  }
 0x189   : > { %1459 = vmatprep.mubr.msk.bf16.mxu1 %vm1663_vm0, %v1662_v1 }
 0x1c7   : > { %v1856_v35 = vpop.f32.mrb[4].mxu0 }
 0x1c8   : > { %510 = vrot.lane.b32.xlu1 %v1856_v35, %s1667_s20  ;;  %507 = vrot.lane.b32.xlu0 %v1856_v35, %s1668_s27  ;;  %v1405_v36 = vpop.f32.mrb[5].mxu0  ;;  %s1686_s27 = smov 16  }
 0x1c9   : > { %v485_v37 = vpop.f32.mrb[6].mxu0 }
 0x1ca   : > { %v1406_v38 = vpop.f32.mrb[7].mxu0 }
 0x1cc   : > { %666 = vrot.lane.b32.xlu1 %v1856_v35, %s1665_s18  ;;  %662 = vrot.lane.b32.xlu0 %v1856_v35, %s1671_s28  ;;  %s1687_s28 = smov 24  }
 0x1d0   : > { %830 = vrot.lane.b32.xlu1 %v1856_v35, %s1664_s17  ;;  %826 = vrot.lane.b32.xlu0 %v1856_v35, %s1672_s30  ;;  %s275_s30 = sand.u32 1, %s1644_s22  }
 0x1d4   : > { %993 = vrot.lane.b32.xlu1 %v1856_v35, %s1666_s19  ;;  %989 = vrot.lane.b32.xlu0 %v1856_v35, %s1673_s8  ;;  %s1314_s8 = sshll.u32 %s275_s30, 3 }
 0x1d6   : > { %v1869_v41 = vpop.f32.mrb[4].mxu1 }
 0x1d7   : > { %v1411_v42 = vpop.f32.mrb[5].mxu1 }
 0x1d8   : > { %v595_v43 = vpop.f32.mrb[6].mxu1  ;;  %v494_v42 = vand.u32 127, %v489_v45 }
 0x1d9   : > { %v1412_v44 = vpop.f32.mrb[7].mxu1  ;;  %v502_v43 = vand.u32 4, %v1872_v46 }
 0x1da   : > { %v495_v48 = vsub.s32 %v494_v42, %v1872_v46 }
 0x1db   : > { %vm1930_vm9 = vcmp.ne.s32.totalorder %v502_v43, 0 }
 0x1dc   : > { %vm497_vm10 = vcmp.le.s32.totalorder %v495_v48, 4294967292  ;;  %vm496_vm11 = vcmp.ge.s32.totalorder %v495_v48, 3 }
 0x23a   : > { %v511_v49 = vpop.permute.xlu1 %510  ;;  %v508_v50 = vpop.permute.xlu0 %507 }
 0x23b   : > { %v514_v51 = vsel %vm513_vm4, %v508_v50, %v511_v49 }
 0x23c   : > { %v517_v52 = vsel %vm1875_vm5, %v514_v51, %v1856_v35 }
 0x23d   : > { %522 = vrot.lane.b32.xlu1 %v517_v52, %s1674_s11  ;;  %519 = vrot.lane.b32.xlu0 %v517_v52, %s1675_s12 }
 0x23e   : > { %v667_v53 = vpop.permute.xlu1 %666  ;;  %v663_v54 = vpop.permute.xlu0 %662 }
 0x23f   : > { %v665_v55 = vsel %vm513_vm4, %v663_v54, %v508_v50 }
 0x240   : > { %v669_v56 = vsel %vm1875_vm5, %v665_v55, %v667_v53 }
 0x241   : > { %674 = vrot.lane.b32.xlu1 %v669_v56, %s1674_s11  ;;  %671 = vrot.lane.b32.xlu0 %v669_v56, %s1675_s12 }
 0x242   : > { %v831_v57 = vpop.permute.xlu1 %830  ;;  %v827_v58 = vpop.permute.xlu0 %826 }
 0x243   : > { %v829_v59 = vsel %vm513_vm4, %v827_v58, %v663_v54 }
 0x244   : > { %v833_v60 = vsel %vm1875_vm5, %v829_v59, %v831_v57 }
 0x245   : > { %838 = vrot.lane.b32.xlu1 %v833_v60, %s1674_s11  ;;  %835 = vrot.lane.b32.xlu0 %v833_v60, %s1675_s12 }
 0x246   : > { %v994_v61 = vpop.permute.xlu1 %993  ;;  %v990_v62 = vpop.permute.xlu0 %989 }
 0x247   : > { %v992_v63 = vsel %vm513_vm4, %v990_v62, %v827_v58 }
 0x248   : > { %v996_v0 = vsel %vm1875_vm5, %v992_v63, %v994_v61 }
 0x249   : > { %1001 = vrot.lane.b32.xlu1 %v996_v0, %s1674_s11  ;;  %998 = vrot.lane.b32.xlu0 %v996_v0, %s1675_s12  ;;  %s1348_s11 = sshll.u32 %s1652_s24, 7  ;;  %s277_s12 = scalar_lea.vmem [#allocation5], %s1314_s8 }
 0x24a   : > { %s1688_s24 = smov [#allocation5]  }
 0x24b   : > { %v1892_v2 = vpop.f32.mrb[8].mxu1 }
 0x24c   : > { %v1423_v3 = vpop.f32.mrb[9].mxu1 }
 0x24d   : > { %548 = vperm.xlu1 %1545, %v1856_v35   ;;  %543 = vperm.xlu0 %1544, %v1856_v35   ;;  %v749_v4 = vpop.f32.mrb[10].mxu1 }
 0x24e   : > { %v1424_v5 = vpop.f32.mrb[11].mxu1 }
 0x251   : > { %1546 = vset.pattern.permute.xlu1 %v1676_v6  ;;  %1547 = vset.pattern.permute.xlu0 %v1677_v7 }
 0x252   : > { %689 = vperm.xlu1 %1546, %v1856_v35  }
 0x253   : > { %v1897_v8 = vpop.f32.mrb[12].mxu1 }
 0x254   : > { %v1435_v9 = vpop.f32.mrb[13].mxu1 }
 0x255   : > { %v912_v10 = vpop.f32.mrb[14].mxu1 }
 0x256   : > { %1549 = vset.pattern.permute.xlu1 %v1678_v11  ;;  %v1436_v12 = vpop.f32.mrb[15].mxu1 }
 0x25b   : > { %v1899_v14 = vpop.f32.mrb[16].mxu1 }
 0x25c   : > { %v1447_v15 = vpop.f32.mrb[17].mxu1 }
 0x25d   : > { %v1075_v16 = vpop.f32.mrb[18].mxu1 }
 0x25e   : > { %v1448_v17 = vpop.f32.mrb[19].mxu1 }
 0x2af   : > { %v523_v20 = vpop.permute.xlu1 %522  ;;  %v520_v21 = vpop.permute.xlu0 %519 }
 0x2b0   : > { %v526_v22 = vsel %vm525_vm6, %v520_v21, %v523_v20 }
 0x2b1   : > { %v529_v23 = vsel %vm1902_vm7, %v526_v22, %v517_v52 }
 0x2b2   : > { %534 = vrot.lane.b32.xlu0 %v529_v23, %s1679_s13  ;;  %531 = vrot.lane.b32.xlu1 %v529_v23, %s1680_s14 }
 0x2b3   : > { %v675_v24 = vpop.permute.xlu1 %674  ;;  %v672_v25 = vpop.permute.xlu0 %671 }
 0x2b4   : > { %v677_v26 = vsel %vm525_vm6, %v672_v25, %v675_v24 }
 0x2b5   : > { %v678_v29 = vsel %vm1902_vm7, %v677_v26, %v669_v56 }
 0x2b6   : > { %694 = vperm.xlu0 %1547, %v1856_v35   ;;  %858 = vperm.xlu1 %1549, %v1856_v35  }
 0x2b7   : > { %v839_v27 = vpop.permute.xlu1 %838  ;;  %v836_v28 = vpop.permute.xlu0 %835 }
 0x2b8   : > { %v841_v31 = vsel %vm525_vm6, %v836_v28, %v839_v27 }
 0x2b9   : > { %v842_v33 = vsel %vm1902_vm7, %v841_v31, %v833_v60 }
 0x2ba   : > { %1548 = vset.pattern.permute.xlu0 %v1681_v30  ;;  %680 = vrot.lane.b32.xlu1 %v678_v29, %s1680_s14 }
 0x2bb   : > { %853 = vperm.xlu0 %1548, %v1856_v35   ;;  %1550 = vset.pattern.permute.xlu1 %v1682_v32  ;;  %v1002_v36 = vpop.permute.xlu1 %1001  ;;  %v999_v37 = vpop.permute.xlu0 %998 }
 0x2bc   : > { %v1004_v38 = vsel %vm525_vm6, %v999_v37, %v1002_v36 }
 0x2bd   : > { %v1005_v39 = vsel %vm1902_vm7, %v1004_v38, %v996_v0 }
 0x2be   : > { %683 = vrot.lane.b32.xlu1 %v678_v29, %s1679_s13 }
 0x2bf   : > { %847 = vrot.lane.b32.xlu0 %v842_v33, %s1679_s13 }
 0x2c0   : > { %1551 = vset.pattern.permute.xlu0 %v1683_v34 }
 0x2c2   : > { %1016 = vperm.xlu1 %1550, %v1856_v35  }
 0x2c3   : > { %1021 = vperm.xlu0 %1551, %v1856_v35  }
 0x2c6   : > { %844 = vrot.lane.b32.xlu1 %v842_v33, %s1680_s14 }
 0x2ca   : > { %1007 = vrot.lane.b32.xlu1 %v1005_v39, %s1680_s14 }
 0x2cc   : > { %v549_v40 = vpop.permute.xlu1 %548  ;;  %v544_v44 = vpop.permute.xlu0 %543 }
 0x2ce   : > { %1010 = vrot.lane.b32.xlu1 %v1005_v39, %s1679_s13  ;;  %s1226_s13 = sshll.u32 %s277_s12, 4  ;;  %s2003_s13 = int_to_ptr.vmem [resolvable:$true] %s1226_s13 }
 0x2d1   : > { %v690_v47 = vpop.permute.xlu1 %689 }
 0x324   : > { %v532_v49 = vpop.permute.xlu1 %531  ;;  %v535_v50 = vpop.permute.xlu0 %534 }
 0x325   : > { %v538_v51 = vsel %vm537_vm8, %v532_v49, %v535_v50 }
 0x326   : > { %v541_v45 = vsel %vm1930_vm9, %v538_v51, %v529_v23 }
 0x327   : > { %v546_v52 = vsel %vm497_vm10, %v544_v44, %v541_v45 }
 0x328   : > { %v551_v53 = vsel %vm496_vm11, %v549_v40, %v546_v52 }
 0x329   : > { %v593_v46 = vadd.f32 %v1869_v41, %v551_v53 }
 0x32b   : > { %v598_v54 = vsel %vm552_vm3, %v593_v46, -inf }
 0x32c   : > { %599 = vmax.xlane.f32.xlu0 %v598_v54 }
 0x335   : > { %v859_v55 = vpop.permute.xlu1 %858  ;;  %v695_v56 = vpop.permute.xlu0 %694 }
 0x339   : > { %v681_v57 = vpop.permute.xlu1 %680 }
 0x33a   : > { %v854_v60 = vpop.permute.xlu0 %853 }
 0x33d   : > { %v684_v58 = vpop.permute.xlu1 %683 }
 0x33e   : > { %v686_v59 = vsel %vm537_vm8, %v681_v57, %v684_v58  ;;  %v848_v4 = vpop.permute.xlu0 %847 }
 0x33f   : > { %v687_v61 = vsel %vm1930_vm9, %v686_v59, %v678_v29 }
 0x340   : > { %v692_v62 = vsel %vm497_vm10, %v690_v47, %v687_v61 }
 0x341   : > { %v1017_v63 = vpop.permute.xlu1 %1016  ;;  %v697_v0 = vsel %vm496_vm11, %v695_v56, %v692_v62 }
 0x342   : > { %v747_v41 = vadd.f32 %v1892_v2, %v697_v0  ;;  %v1022_v18 = vpop.permute.xlu0 %1021 }
 0x344   : > { %v752_v3 = vsel %vm552_vm3, %v747_v41, -inf }
 0x345   : > { %v845_v5 = vpop.permute.xlu1 %844  ;;  %753 = vmax.xlane.f32.xlu1 %v752_v3 }
 0x346   : > { %v850_v6 = vsel %vm537_vm8, %v845_v5, %v848_v4 }
 0x347   : > { %v851_v7 = vsel %vm1930_vm9, %v850_v6, %v842_v33 }
 0x348   : > { %v856_v9 = vsel %vm497_vm10, %v854_v60, %v851_v7 }
 0x349   : > { %v1008_v10 = vpop.permute.xlu1 %1007  ;;  %v861_v11 = vsel %vm496_vm11, %v859_v55, %v856_v9 }
 0x34a   : > { %v910_v12 = vadd.f32 %v1897_v8, %v861_v11 }
 0x34c   : > { %v915_v15 = vsel %vm552_vm3, %v910_v12, -inf }
 0x34d   : > { %v1011_v2 = vpop.permute.xlu1 %1010  ;;  %916 = vmax.xlane.f32.xlu0 %v915_v15 }
 0x34e   : > { %v1013_v16 = vsel %vm537_vm8, %v1008_v10, %v1011_v2 }
 0x34f   : > { %v1014_v17 = vsel %vm1930_vm9, %v1013_v16, %v1005_v39 }
 0x350   : > { %v1019_v19 = vsel %vm497_vm10, %v1017_v63, %v1014_v17 }
 0x351   : > { %v1024_v20 = vsel %vm496_vm11, %v1022_v18, %v1019_v19  ;;  %v1564_v18 = vld [vmem:[%s2054_s5] sm:$0xff]  }
 0x352   : > { %v1073_v21 = vadd.f32 %v1899_v14, %v1024_v20  ;;  %1456 = vmatpush3.bf16.msra.mxu1 %v1564_v18  ;;  %v1565_v20 = vld [vmem:[%s2054_s5 + $0x8] sm:$0xff]  }
 0x353   : > { %1457 = vmatprep.subr.bf16.mxu1 %v1662_v1 }
 0x354   : > { %v1078_v22 = vsel %vm552_vm3, %v1073_v21, -inf }
 0x355   : > { %1079 = vmax.xlane.f32.xlu0 %v1078_v22 }
 0x356   : > { %362 = vrot.lane.b32.xlu1 %v1823_v13, %s1684_s15  ;;  %1458 = vmatpush3.bf16.msra.mxu1 %v1565_v20 }
 0x3b9   : > { %v600_v8 = vpop.xlane.xlu0 %599 }
 0x3ba   : > { %v601_v23 = vsub.f32 %v593_v46, %v600_v8 }
 0x3bc   : > { %v602_v24 = vmul.f32 1.442695, %v601_v23 }
 0x3be   : > { %1566 = vpow2.f32 %v602_v24 }
 0x3c8   : > { %v1567_v25 = vpop.eup %1566 }
 0x3c9   : > { %v604_v26 = vsel %vm552_vm3, %v1567_v25, 0.0 }
 0x3ca   : > { %605 = vadd.xlane.f32.xlu0 %v604_v26 }
 0x3d2   : > { %v754_v27 = vpop.xlane.xlu1 %753 }
 0x3d3   : > { %v755_v28 = vsub.f32 %v747_v41, %v754_v27 }
 0x3d5   : > { %v756_v29 = vmul.f32 1.442695, %v755_v28 }
 0x3d6   : > { %v363_v30 = vpop.permute.xlu1 %362 }
 0x3d7   : > { %1568 = vpow2.f32 %v756_v29  ;;  %365 = vst.msk [vmem:[#allocation3] sm:$0xf] %vm357_vm2, %v363_v30 }
 0x3da   : > { %v917_v14 = vpop.xlane.xlu0 %916 }
 0x3db   : > { %v918_v31 = vsub.f32 %v910_v12, %v917_v14 }
 0x3dd   : > { %v919_v32 = vmul.f32 1.442695, %v918_v31 }
 0x3de   : > { %v505_v13 = vld [vmem:[#allocation3] sm:$0xf] }
 0x3df   : > { %v1561_v33 = vld [vmem:[#allocation3] ss:$0 sps:$4 sm:$0xff]   ;;  %1570 = vpow2.f32 %v919_v32  ;;  %v615_v34 = vsel %vm613_vm12, %v505_v13, 0 }
 0x3e0   : > { %1414 = vmatpush3.bf16.msra.mxu0 %v615_v34  ;;  %767 = vrot.lane.b32.xlu1 %v1561_v33, %s1665_s18  ;;  %v1562_v39 = vld [vmem:[#allocation3] ss:$0 sps:$4 sm:$0xff]   ;;  %s1582_s18 = scalar_lea.vmem %s2003_s13, 128 }
 0x3e1   : > { %v1569_v36 = vpop.eup %1568  ;;  %1425 = vmatprep.subr.bf16.mxu0 %v1662_v1  ;;  %v1563_v35 = vld [vmem:[#allocation3] ss:$0 sps:$4 sm:$0xff]   ;;  %p1583_p12 = scmp.ne.s32.totalorder %s2003_s13, %s1582_s18 }
 0x3e2   : > { %v1080_v37 = vpop.xlane.xlu0 %1079  ;;  %v758_v38 = vsel %vm552_vm3, %v1569_v36, 0.0 }
 0x3e3   : > { %v1081_v40 = vsub.f32 %v1073_v21, %v1080_v37  ;;  %759 = vadd.xlane.f32.xlu0 %v758_v38  ;;  %p1584_p13 = pnand %p1583_p12, %p1764_p4 }
 0x3e4   : > { %1093 = vrot.lane.b32.xlu1 %v1562_v39, %s1666_s19  ;;  %s1586_s19 = sshll.u32 %s1688_s24, 4  ;;  %s1587_s19 = int_to_ptr.vmem [resolvable:$false] %s1586_s19 }
 0x3e5   : > { %v1082_v42 = vmul.f32 1.442695, %v1081_v40  ;;  %p1585_p0 = pneg %p1584_p13  ;;  %s1588_s20 = scalar_lea.vmem %s1587_s19, 256 }
 0x3e6   : > { %p1589_p1 = scmp.lt.s32.totalorder %s2003_s13, %s1587_s19  ;;  %p1590_p2 = scmp.lt.s32.totalorder %s1588_s20, %s1582_s18 }
 0x3e7   : > { %1572 = vpow2.f32 %v1082_v42 }
 0x3e8   : > { %p1591_p3 = por %p1590_p2, %p1589_p1 }
 0x3e9   : > { %v1571_v43 = vpop.eup %1570 }
 0x3ea   : > { %v921_v44 = vsel %vm552_vm3, %v1571_v43, 0.0  ;;  %p1592_p5 = pnand %p1591_p3, %p1585_p0 }
 0x3eb   : > { %922 = vadd.xlane.f32.xlu0 %v921_v44 }
 0x3f1   : > { %v1573_v47 = vpop.eup %1572 }
 0x3f2   : > { %v1084_v48 = vsel %vm552_vm3, %v1573_v47, 0.0 }
 0x3f3   : > { %1085 = vadd.xlane.f32.xlu0 %v1084_v48 }
 0x409   : > { %930 = vrot.lane.b32.xlu0 %v1563_v35, %s1664_s17  ;;  %s1212_s17 = scalar_lea.sflag [#allocation6], %s275_s30 }
 0x452   : > { %v768_v45 = vpop.permute.xlu1 %767 }
 0x453   : > { %v773_v53 = vsel %vm613_vm12, %v768_v45, 0 }
 0x456   : > { %v1094_v63 = vpop.permute.xlu1 %1093 }
 0x457   : > { %v606_v49 = vpop.xlane.xlu0 %605  ;;  %v1099_v41 = vsel %vm613_vm12, %v1094_v63, 0 }
 0x458   : > { %1574 = vrcp.f32 %v606_v49 }
 0x462   : > { %v1575_v50 = vpop.eup %1574 }
 0x463   : > { %v608_v51 = vmul.f32 %v1575_v50, %v1567_v25 }
 0x465   : > { %v609_v52 = vpack.c.bf16 %v608_v51, %v608_v51 }
 0x467   : > { %1416 = vmatmul.mubr.msk.bf16.vlgmr.msra.gmra.mrb[8].mxu0 %vm552_vm3, %v609_v52 }
 0x468   : > { %1426 = vmatpush3.bf16.msra.mxu0 %v773_v53  ;;  %1427 = vmatprep.mubr.msk.bf16.mxu0 %vm1663_vm0, %v1662_v1 }
 0x469   : > { %1437 = vmatprep.subr.bf16.mxu0 %v1662_v1 }
 0x470   : > { %v760_v46 = vpop.xlane.xlu0 %759 }
 0x471   : > { %1576 = vrcp.f32 %v760_v46 }
 0x478   : > { %v923_v54 = vpop.xlane.xlu0 %922 }
 0x479   : > { %1578 = vrcp.f32 %v923_v54 }
 0x47b   : > { %v1577_v55 = vpop.eup %1576 }
 0x47c   : > { %v762_v56 = vmul.f32 %v1577_v55, %v1569_v36 }
 0x47e   : > { %v763_v57 = vpack.c.bf16 %v762_v56, %v762_v56 }
 0x480   : > { %1428 = vmatmul.mubr.msk.bf16.vlgmr.msra.gmra.mrb[12].mxu0 %vm552_vm3, %v763_v57  ;;  %v1086_v58 = vpop.xlane.xlu0 %1085 }
 0x481   : > { %1580 = vrcp.f32 %v1086_v58  ;;  %1439 = vmatprep.mubr.msk.bf16.mxu0 %vm1663_vm0, %v1662_v1 }
 0x483   : > { %v1579_v59 = vpop.eup %1578 }
 0x484   : > { %v925_v60 = vmul.f32 %v1579_v59, %v1571_v43  ;;  %v931_v61 = vpop.permute.xlu0 %930 }
 0x485   : > { %v936_v62 = vsel %vm613_vm12, %v931_v61, 0 }
 0x486   : > { %1438 = vmatpush3.bf16.msra.mxu0 %v936_v62  ;;  %v926_v0 = vpack.c.bf16 %v925_v60, %v925_v60 }
 0x487   : > { %1449 = vmatprep.subr.bf16.mxu0 %v1662_v1 }
 0x489   : > { %1440 = vmatmul.mubr.msk.bf16.vlgmr.msra.gmra.mrb[16].mxu0 %vm552_vm3, %v926_v0 }
 0x48a   : > { %1450 = vmatpush3.bf16.msra.mxu0 %v1099_v41  ;;  %1451 = vmatprep.mubr.msk.bf16.mxu0 %vm1663_vm0, %v1662_v1  ;;  %vm1148_vm0 = vcmask 257216  }
 0x48b   : > { %v1581_v3 = vpop.eup %1580 }
 0x48c   : > { %v1088_v4 = vmul.f32 %v1581_v3, %v1573_v47 }
 0x48e   : > { %v1089_v5 = vpack.c.bf16 %v1088_v4, %v1088_v4 }
 0x491   : > { %1452 = vmatmul.mubr.msk.bf16.vlgmr.msra.gmra.mrb[20].mxu0 %vm552_vm3, %v1089_v5 }
 0x53a   : > { %v651_v6 = vpop.f32.mrb[8].mxu0 }
 0x53b   : > { %v657_v7 = vpack.c.bf16 %v651_v6, %v651_v6  ;;  %v1417_v9 = vpop.f32.mrb[9].mxu0 }
 0x53c   : > { %v654_v10 = vpop.f32.mrb[10].mxu0 }
 0x53d   : > { %659 = vst.msk [vmem:[#allocation4] sm:$0xf] %vm658_vm13, %v657_v7  ;;  %v1418_v11 = vpop.f32.mrb[11].mxu0 }
 0x553   : > { %v809_v12 = vpop.f32.mrb[12].mxu0 }
 0x554   : > { %v1352_v15 = vpack.c.bf16 %v809_v12, %v809_v12  ;;  %v1429_v2 = vpop.f32.mrb[13].mxu0 }
 0x555   : > { %v812_v16 = vpop.f32.mrb[14].mxu0 }
 0x556   : > { %819 = vrot.lane.b32.xlu1 %v1352_v15, %s1685_s16  ;;  %v1430_v17 = vpop.f32.mrb[15].mxu0  ;;  %s2001_s16 = scalar_lea.hbm %s2055_s6, %s1348_s11 }
 0x55c   : > { %v972_v19 = vpop.f32.mrb[16].mxu0 }
 0x55d   : > { %v1353_v21 = vpack.c.bf16 %v972_v19, %v972_v19  ;;  %v1441_v22 = vpop.f32.mrb[17].mxu0 }
 0x55e   : > { %v975_v8 = vpop.f32.mrb[18].mxu0 }
 0x55f   : > { %982 = vrot.lane.b32.xlu1 %v1353_v21, %s1686_s27  ;;  %v1442_v23 = vpop.f32.mrb[19].mxu0 }
 0x564   : > { %v1135_v24 = vpop.f32.mrb[20].mxu0 }
 0x565   : > { %v1354_v25 = vpack.c.bf16 %v1135_v24, %v1135_v24  ;;  %v1453_v26 = vpop.f32.mrb[21].mxu0 }
 0x566   : > { %v1138_v27 = vpop.f32.mrb[22].mxu0 }
 0x567   : > { %1145 = vrot.lane.b32.xlu1 %v1354_v25, %s1687_s28  ;;  %v1454_v28 = vpop.f32.mrb[23].mxu0 }
 0x5c8   : > { %v820_v29 = vpop.permute.xlu1 %819 }
 0x5c9   : > { %823 = vst.msk [vmem:[#allocation4] sm:$0xf] %vm822_vm14, %v820_v29 }
 0x5d1   : > { %v983_v30 = vpop.permute.xlu1 %982 }
 0x5d2   : > { %986 = vst.msk [vmem:[#allocation4] sm:$0xf] %vm985_vm15, %v983_v30 }
 0x5d9   : > { %v1146_v1 = vpop.permute.xlu1 %1145 }
 0x5da   : > { %1149 = vst.msk [vmem:[#allocation4] sm:$0xf] %vm1148_vm0, %v1146_v1 }
 0x5e1   : > { %v1150_v14 = vld [vmem:[#allocation4] sm:$0xf] }
 0x5e2   : > { %1460 = vmatmul.mubr.msk.bf16.vlgmr.msra.gmra.mrb[20].mxu1 %vm312_vm1, %v1150_v14 }
 0x6b5   : > { %v1204_v31 = vpop.f32.mrb[20].mxu1 }
 0x6b6   : > { %1210 = vst.msk [vmem:[%s277_s12] sm:$0xff] %vm312_vm1, %v1204_v31  ;;  %v1461_v32 = vpop.f32.mrb[21].mxu1 }
 0x6b7   : > { %v1207_v13 = vpop.f32.mrb[22].mxu1 }
 0x6b8   : > { %1595 = shalt.err (!%p1592_p5)
}
 0x6b9   : > { %s1596_s27 = scalar_lea.hbm %s2001_s16, 128  ;;  %s1600_s8 = scalar_lea.hbm %s2055_s6, 256 }
 0x6ba   : > { %p1597_p6 = scmp.ne.s32.totalorder %s2001_s16, %s1596_s27  ;;  %p1601_p10 = scmp.lt.u32.totalorder %s2001_s16, %s2055_s6 }
 0x6bb   : > { %p1602_p11 = scmp.lt.u32.totalorder %s1600_s8, %s1596_s27  ;;  %p1604_p13 = scmp.lt.u32.totalorder %s1596_s27, %s2001_s16 }
 0x6bc   : > { %p1598_p7 = pnand %p1597_p6, %p1764_p4 }
 0x6bd   : > { %p1603_p12 = por %p1602_p11, %p1601_p10 }
 0x6be   : > { %p1599_p9 = pneg %p1598_p7 }
 0x6bf   : > { %p1605_p0 = por %p1604_p13, %p1603_p12 }
 0x6c1   : > { %p1606_p1 = pnand %p1605_p0, %p1599_p9 }
 0x6c3   : > { %1609 = shalt.err (!%p1606_p1)
}
 0x6c4   : > { %1463 = dma.vmem_to_hbm [thread:$0]  (%p1764_p4), %s2003_s13, 128, %s2001_s16, %s1212_s17   ;;  %v1462_v33 = vpop.f32.mrb[23].mxu1 }
 0x6c5 PF: > { %p1469_p2 = scmp.ge.s32.totalorder %s1660_s26, 2  ;;  %s1238_s14 = sand.u32 1, %s1640_s21  }
 0x6c6   : > { %s1239_s15 = scalar_lea.sflag [#allocation6], %s1238_s14 }
 0x6c7   : > { %p1466_p3 = pnand %p1469_p2, %p1771_p8 }
 0x6c9   : > { %1635 = dma.done.wait (!%p1466_p3), %s1239_s15, 128  }
 0x6ca   : > { %1637 = vsyncadd (!%p1466_p3), %s1239_s15, 4294967168  ;;  %s19_s26 = sadd.s32 1, %s1660_s26   ;;  %s2064_s21 = smov %s1644_s22 }
 0x6cb   : > { %p16_p5 = scmp.ge.s32.totalorder %s19_s26, 4   ;;  %s2065_s22 = smov %s1648_s23 }
 0x6cc   : > { %s2066_s23 = smov %s1777_s10  ;;  %s2067_s24 = smov %s1656_s25 }
 0x6cd   : > { %s2068_s25 = smov %s2070_s29  ;;  %18 = sbr.rel (!%p16_p5) target bundleno = 4 (0x4), region = 86 }
 0x6d4   :  { %1244 = vsyncpa [#allocation6], 1 }
 0x6d5   :  { %1246 = vsyncpa [#allocation6 + $0x1], 1 }

</bundles_post_ra>
